<compile_context>
chip_gen: v5e
topology: v5e:2x2
jax: 0.10.0
libtpu: 0.0.40
codegen_flags: <defaults>
</compile_context>

<pallas_src>
import functools
import math

import jax
import jax.numpy as jnp
from jax.experimental import pallas as pl
from jax.experimental.pallas import tpu as pltpu


def _round_up(n, m):
    return ((n + m - 1) // m) * m


def _lpe_kernel(eff_ref, x_ref, w_ref, o_ref, *, scale, precision):
    # eff_ref: (tR, 1)  int32   clamped/masked position indices
    # x_ref:   (tR, D)  native dtype (f32 or bf16)
    # w_ref:   (V, D)   PE table, resident across the grid
    # o_ref:   (tR, D)  native dtype
    tR = x_ref.shape[0]
    V = w_ref.shape[0]

    # One-hot gather of PE rows on the MXU: (tR, V) @ (V, D) -> f32 accumulate.
    # TODO(synk): for very large max_len (V >~ 2048) split V over a second
    # "arbitrary" grid axis with an f32 accumulator instead of a full one-hot.
    iota_v = jax.lax.broadcasted_iota(jnp.int32, (tR, V), 1)
    onehot = (iota_v == eff_ref[...]).astype(w_ref.dtype)
    emb = jnp.dot(onehot, w_ref[...],
                  preferred_element_type=jnp.float32, precision=precision)

    # Multiply-add in f32 (v5e VPU has no bf16 ALU), explicit downcast on store.
    o_ref[...] = (scale * x_ref[...].astype(jnp.float32) + emb).astype(o_ref.dtype)


def learned_positional_encoding(x, mask, indices, pe_weight, *, row_tile=None,
                                pe_dtype=None):
    """x: [B,L,D] (f32/bf16), mask: [B,L] bool, indices: [B,L] int,
    pe_weight: [max_len+1, D] (row max_len is the zero padding row)."""
    B, L, D = x.shape
    V, Dw = pe_weight.shape
    assert D == Dw
    pad_idx = V - 1  # == max_len
    R = B * L

    x_dtype = x.dtype
    x_itemsize = jnp.dtype(x_dtype).itemsize

    # Table dtype: bf16 table for bf16 activations (0/1 one-hot is exact);
    # f32 activations keep an f32 table + HIGHEST-precision gather.
    if pe_dtype is None:
        pe_dtype = jnp.bfloat16 if x_dtype == jnp.bfloat16 else jnp.float32
    table = pe_weight.astype(pe_dtype)
    t_itemsize = jnp.dtype(pe_dtype).itemsize
    precision = (jax.lax.Precision.HIGHEST
                 if jnp.dtype(pe_dtype) == jnp.dtype(jnp.float32) else None)

    # ---- tiny wrapper-side index prep ([R, 1] int32) -------------------------
    # TODO(synk): negative, un-masked indices produce a zero embedding here,
    # whereas torch.nn.Embedding would raise; callers must not pass them.
    eff = jnp.where(mask, pad_idx, indices.astype(jnp.int32))
    eff = jnp.minimum(eff, pad_idx).astype(jnp.int32)

    # Flat row views — reshapes are free; no padding, no output slice.
    x_rows = x.reshape(R, D)
    eff_rows = eff.reshape(R, 1)

    # ---- per-generation VMEM budget ------------------------------------------
    try:
        vmem_cap = int(pltpu.get_tpu_info().vmem_capacity_bytes)
    except Exception:
        vmem_cap = 64 << 20                       # v7x-safe fallback
    vmem_limit = min(max(32 << 20, (vmem_cap * 3) // 4), 112 << 20)

    # ---- adaptive row tile -----------------------------------------------------
    sub = max(8, 32 // x_itemsize)                # f32: 8, bf16: 16, int8/fp8: 32
    Dl = _round_up(D, 128)                        # lane-padded feature width
    Vl = _round_up(V, 128)
    table_bytes = _round_up(V, 8) * Dl * t_itemsize   # single-buffered resident table

    def per_step_bytes(t):
        return (2 * t * Dl * x_itemsize           # x tile, double-buffered
                + 2 * t * Dl * x_itemsize         # out tile, double-buffered
                + 2 * t * 128 * 4                 # eff (t,1) i32, lane-padded
                + 3 * t * Dl * 4                  # f32 temporaries (upcast/emb/sum)
                + 2 * t * Vl * t_itemsize)        # iota / one-hot intermediates

    if row_tile is None:
        # ~4 MiB of x per grid step amortizes the ~0.35us/step overhead.
        tR = max(sub, (4 << 20) // max(1, Dl * x_itemsize))
    else:
        tR = max(sub, int(row_tile))
    tR = min(_round_up(tR, sub), _round_up(R, sub))

    budget = vmem_limit - table_bytes - (4 << 20)     # headroom for compiler scratch
    while tR > sub and per_step_bytes(tR) > budget:
        tR = _round_up(tR // 2, sub)

    # v7x megacore: keep at least 2 grid steps so ("parallel",) uses both TCs.
    if row_tile is None and R > sub and pl.cdiv(R, tR) < 2:
        tR = _round_up(pl.cdiv(R, 2), sub)

    grid = (pl.cdiv(R, tR),)                      # ragged last block is masked

    kernel = functools.partial(_lpe_kernel,
                               scale=float(math.sqrt(float(D))),
                               precision=precision)

    def build(table_pipeline_mode):
        if table_pipeline_mode is None:
            table_spec = pl.BlockSpec((V, D), lambda i: (0, 0))
        else:
            table_spec = pl.BlockSpec((V, D), lambda i: (0, 0),
                                      pipeline_mode=table_pipeline_mode)
        return pl.pallas_call(
            kernel,
            out_shape=jax.ShapeDtypeStruct((R, D), x_dtype),
            grid=grid,
            in_specs=[
                pl.BlockSpec((tR, 1), lambda i: (i, 0)),   # eff indices
                pl.BlockSpec((tR, D), lambda i: (i, 0)),   # x tile (native dtype)
                table_spec,                                # PE table, resident
            ],
            out_specs=pl.BlockSpec((tR, D), lambda i: (i, 0)),
            compiler_params=pltpu.CompilerParams(
                dimension_semantics=("parallel",),
                vmem_limit_bytes=vmem_limit,
            ),
        )

    try:
        # Constant index_map -> single-buffer the table; frees VMEM for row tiles.
        out = build(pl.Buffered(1))(eff_rows, x_rows, table)
    except Exception:
        out = build(None)(eff_rows, x_rows, table)

    return out.reshape(B, L, D)


def _reference(x, mask, indices, pe_weight, pe_dtype):
    """Pure-JAX reference mirroring the kernel's table dtype."""
    V, D = pe_weight.shape
    pad_idx = V - 1
    eff = jnp.where(mask, pad_idx, indices.astype(jnp.int32))
    eff = jnp.minimum(eff, pad_idx)
    emb = pe_weight.astype(pe_dtype).astype(jnp.float32)[eff]
    out = math.sqrt(float(D)) * x.astype(jnp.float32) + emb
    return out.astype(x.dtype)


if __name__ == "__main__":
    B, L, D = 2, 16, 32
    max_len = 20
    V = max_len + 1

    key = jax.random.PRNGKey(0)
    kx, kw, ki, km = jax.random.split(key, 4)

    x = jax.random.normal(kx, (B, L, D), dtype=jnp.float32)

    # nn.Embedding init: N(0, 1), padding row (index max_len) zeroed.
    pe_weight = jax.random.normal(kw, (V, D), dtype=jnp.float32)
    pe_weight = pe_weight.at[max_len].set(0.0)

    # Indices may exceed max_len to exercise the clamp path.
    indices = jax.random.randint(ki, (B, L), 0, max_len + 5, dtype=jnp.int32)
    mask = jax.random.bernoulli(km, 0.25, (B, L))

    # f32 path, adaptive tiling (>= 2 grid steps at this shape for megacore).
    out = jax.block_until_ready(
        learned_positional_encoding(x, mask, indices, pe_weight))
    ref = _reference(x, mask, indices, pe_weight, jnp.float32)
    assert out.shape == (B, L, D)
    assert jnp.allclose(out, ref, atol=1e-4, rtol=1e-4), "f32 mismatch vs reference"

    # f32 path, ragged grid: row_tile=24 over R=32 -> masked last block (no padding).
    out_r = jax.block_until_ready(
        learned_positional_encoding(x, mask, indices, pe_weight, row_tile=24))
    assert jnp.allclose(out_r, ref, atol=1e-4, rtol=1e-4), "ragged-grid mismatch"

    # bf16 activations (native-dtype stream, bf16 table, bf16 store).
    xb = x.astype(jnp.bfloat16)
    outb = jax.block_until_ready(
        learned_positional_encoding(xb, mask, indices, pe_weight))
    refb = _reference(xb, mask, indices, pe_weight, jnp.bfloat16)
    assert outb.dtype == jnp.bfloat16
    assert jnp.allclose(outb.astype(jnp.float32), refb.astype(jnp.float32),
                        atol=2e-2, rtol=2e-2), "bf16 mismatch vs reference"

    print("KERNEL_OK")
</pallas_src>

<mosaic_0001>
module attributes {stable_mosaic.version = 11 : i64} {
  func.func @_lpe_kernel(%arg0: i32, %arg1: memref<16x1xi32, #tpu.memory_space<vmem>>, %arg2: memref<16x32xf32, #tpu.memory_space<vmem>>, %arg3: memref<21x32xf32, #tpu.memory_space<vmem>>, %arg4: memref<16x32xf32, #tpu.memory_space<vmem>>) attributes {dimension_semantics = [#tpu.dimension_semantics<parallel>], iteration_bounds = array<i64: 2>, scalar_prefetch = 0 : i64, scratch_operands = 0 : i64, tpu.core_type = #tpu.core_type<tc>, window_params = [{transform_indices = @transform_0, window_bounds = array<i64: 16, 1>}, {transform_indices = @transform_1, window_bounds = array<i64: 16, 32>}, {pipeline_mode = #tpu.pipeline_mode<synchronous>, transform_indices = @transform_2, window_bounds = array<i64: 21, 32>}, {transform_indices = @transform_3, window_bounds = array<i64: 16, 32>}]} {
    %0 = tpu.iota {dimensions = array<i32: 1>} : vector<16x21xi32>
    %c0 = arith.constant 0 : index
    %c0_0 = arith.constant 0 : index
    %1 = vector.load %arg1[%c0, %c0_0] : memref<16x1xi32, #tpu.memory_space<vmem>>, vector<16x1xi32>
    %2 = vector.broadcast %1 : vector<16x1xi32> to vector<16x21xi32>
    %3 = arith.cmpi eq, %0, %2 : vector<16x21xi32>
    %4 = arith.extui %3 : vector<16x21xi1> to vector<16x21xi32>
    %5 = arith.sitofp %4 : vector<16x21xi32> to vector<16x21xf32>
    %c0_1 = arith.constant 0 : index
    %c0_2 = arith.constant 0 : index
    %6 = vector.load %arg3[%c0_1, %c0_2] : memref<21x32xf32, #tpu.memory_space<vmem>>, vector<21x32xf32>
    %cst = arith.constant dense<0.000000e+00> : vector<16x32xf32>
    %7 = tpu.matmul %5, %6, %cst {dimension_numbers = #tpu.dot_dimension_numbers<[1], [0], [0], [1], [0, 0, 1, 1], [], []>, precision = #tpu.contract_precision<fp32>} : vector<16x21xf32>, vector<21x32xf32>, vector<16x32xf32> -> vector<16x32xf32>
    %c0_3 = arith.constant 0 : index
    %c0_4 = arith.constant 0 : index
    %8 = vector.load %arg2[%c0_3, %c0_4] : memref<16x32xf32, #tpu.memory_space<vmem>>, vector<16x32xf32>
    %cst_5 = arith.constant 5.65685415 : f32
    %9 = vector.broadcast %cst_5 : f32 to vector<16x32xf32>
    %10 = arith.mulf %9, %8 : vector<16x32xf32>
    %11 = arith.addf %10, %7 : vector<16x32xf32>
    %c0_6 = arith.constant 0 : index
    %c0_7 = arith.constant 0 : index
    %12 = vector.load %arg4[%c0_6, %c0_7] : memref<16x32xf32, #tpu.memory_space<vmem>>, vector<16x32xf32>
    tpu.vector_store %arg4[%c0_6, %c0_7], %11 {strides = array<i32>} : memref<16x32xf32, #tpu.memory_space<vmem>>, vector<16x32xf32>,
    return
  }
  func.func @transform_0(%arg0: i32) -> (i32, i32) {
    %c0_i32 = arith.constant 0 : i32
    %c0_i32_0 = arith.constant 0 : i32
    return %arg0, %c0_i32 : i32, i32
  }
  func.func @transform_1(%arg0: i32) -> (i32, i32) {
    %c0_i32 = arith.constant 0 : i32
    %c0_i32_0 = arith.constant 0 : i32
    return %arg0, %c0_i32 : i32, i32
  }
  func.func @transform_2(%arg0: i32) -> (i32, i32) {
    %c0_i32 = arith.constant 0 : i32
    %c0_i32_0 = arith.constant 0 : i32
    %c0_i32_1 = arith.constant 0 : i32
    return %c0_i32, %c0_i32_0 : i32, i32
  }
  func.func @transform_3(%arg0: i32) -> (i32, i32) {
    %c0_i32 = arith.constant 0 : i32
    %c0_i32_0 = arith.constant 0 : i32
    return %arg0, %c0_i32 : i32, i32
  }
}

module attributes {stable_mosaic.version = 11 : i64} {
  func.func @_lpe_kernel(%arg0: i32, %arg1: memref<16x1xi32, #tpu.memory_space<vmem>>, %arg2: memref<16x32xf32, #tpu.memory_space<vmem>>, %arg3: memref<21x32xf32, #tpu.memory_space<vmem>>, %arg4: memref<16x32xf32, #tpu.memory_space<vmem>>) attributes {dimension_semantics = [#tpu.dimension_semantics<parallel>], iteration_bounds = array<i64: 2>, scalar_prefetch = 0 : i64, scratch_operands = 0 : i64, tpu.core_type = #tpu.core_type<tc>, window_params = [{transform_indices = @transform_0, window_bounds = array<i64: 16, 1>}, {transform_indices = @transform_1, window_bounds = array<i64: 16, 32>}, {pipeline_mode = #tpu.pipeline_mode<synchronous>, transform_indices = @transform_2, window_bounds = array<i64: 21, 32>}, {transform_indices = @transform_3, window_bounds = array<i64: 16, 32>}]} {
    %0 = tpu.iota {dimensions = array<i32: 1>} : vector<16x21xi32>
    %c0 = arith.constant 0 : index
    %c0_0 = arith.constant 0 : index
    %1 = vector.load %arg1[%c0, %c0_0] : memref<16x1xi32, #tpu.memory_space<vmem>>, vector<16x1xi32>
    %2 = vector.broadcast %1 : vector<16x1xi32> to vector<16x21xi32>
    %3 = arith.cmpi eq, %0, %2 : vector<16x21xi32>
    %4 = arith.extui %3 : vector<16x21xi1> to vector<16x21xi32>
    %5 = arith.sitofp %4 : vector<16x21xi32> to vector<16x21xf32>
    %c0_1 = arith.constant 0 : index
    %c0_2 = arith.constant 0 : index
    %6 = vector.load %arg3[%c0_1, %c0_2] : memref<21x32xf32, #tpu.memory_space<vmem>>, vector<21x32xf32>
    %cst = arith.constant dense<0.000000e+00> : vector<16x32xf32>
    %7 = tpu.matmul %5, %6, %cst {dimension_numbers = #tpu.dot_dimension_numbers<[1], [0], [0], [1], [0, 0, 1, 1], [], []>, precision = #tpu.contract_precision<fp32>} : vector<16x21xf32>, vector<21x32xf32>, vector<16x32xf32> -> vector<16x32xf32>
    %c0_3 = arith.constant 0 : index
    %c0_4 = arith.constant 0 : index
    %8 = vector.load %arg2[%c0_3, %c0_4] : memref<16x32xf32, #tpu.memory_space<vmem>>, vector<16x32xf32>
    %cst_5 = arith.constant 5.65685415 : f32
    %9 = vector.broadcast %cst_5 : f32 to vector<16x32xf32>
    %10 = arith.mulf %9, %8 : vector<16x32xf32>
    %11 = arith.addf %10, %7 : vector<16x32xf32>
    %c0_6 = arith.constant 0 : index
    %c0_7 = arith.constant 0 : index
    %12 = vector.load %arg4[%c0_6, %c0_7] : memref<16x32xf32, #tpu.memory_space<vmem>>, vector<16x32xf32>
    tpu.vector_store %arg4[%c0_6, %c0_7], %11 {strides = array<i32>} : memref<16x32xf32, #tpu.memory_space<vmem>>, vector<16x32xf32>,
    return
  }
  func.func @transform_0(%arg0: i32) -> (i32, i32) {
    %c0_i32 = arith.constant 0 : i32
    %c0_i32_0 = arith.constant 0 : i32
    return %arg0, %c0_i32 : i32, i32
  }
  func.func @transform_1(%arg0: i32) -> (i32, i32) {
    %c0_i32 = arith.constant 0 : i32
    %c0_i32_0 = arith.constant 0 : i32
    return %arg0, %c0_i32 : i32, i32
  }
  func.func @transform_2(%arg0: i32) -> (i32, i32) {
    %c0_i32 = arith.constant 0 : i32
    %c0_i32_0 = arith.constant 0 : i32
    %c0_i32_1 = arith.constant 0 : i32
    return %c0_i32, %c0_i32_0 : i32, i32
  }
  func.func @transform_3(%arg0: i32) -> (i32, i32) {
    %c0_i32 = arith.constant 0 : i32
    %c0_i32_0 = arith.constant 0 : i32
    return %arg0, %c0_i32 : i32, i32
  }
}

</mosaic_0001>

<bundles_post_ra>
// kernel: tpu_custom_call.1
= control target key start
LH: loop header
LB: loop body
LE: loop exit
PB: predicated region body
PF: predicated region fallthrough
CT: control target
= control target key end

     0   :  { %8 = vsyncpa [#allocation3], 0  ;;  %s886_s0 = inlined_call_operand.vmem [shape: s32[32,1], index: 0, kind: input, shape index: {}]   ;;  %s887_s1 = inlined_call_operand.vmem [shape: f32[32,32], index: 1, kind: input, shape index: {}]   ;;  %s888_s2 = inlined_call_operand.hbm [shape: f32[21,32], index: 2, kind: input, shape index: {}]   ;;  %s889_s3 = inlined_call_operand.hbm [shape: f32[32,32], index: 3, kind: output, shape index: {}]  }
   0x1   :  { %9 = vsyncpa [#allocation4], 0 }
   0x2   :  { %11 = vsyncpa [#allocation4 + $0x1], 0  ;;  %s768_s12 = smov 0   ;;  %s770_s13 = smov 0  }
   0x3   :  { %s772_s14 = smov 0   ;;  %s774_s15 = smov 0  }
   0x4 LB: > { %s789_s16 = sadd.s32 4294967295, %s739_s15   ;;  %s555_s17 = sadd.s32 4294967294, %s739_s15   ;;  %s739_s15 = sphi %s774_s15, %s895_s15   ;;  %s735_s14 = sphi %s772_s14, %s894_s14   ;;  %s731_s13 = sphi %s770_s13, %s893_s13   ;;  %s727_s12 = sphi %s768_s12, %s892_s12  }
   0x5   : > { %s793_s18 = sadd.s32 1, %s739_s15   ;;  %s97_s19 = sadd.s32 1, %s735_s14 }
   0x6   : > { %s94_s20 = ssub.s32 %s739_s15, %s793_s18  ;;  %p107_p0 = scmp.ne.s32.totalorder %s735_s14, %s731_s13 }
   0x7   : > { %p95_p1 = scmp.eq.s32.totalorder %s94_s20, 0  ;;  %p108_p2 = scmp.eq.s32.totalorder %s789_s16, 1 }
   0x8   : > { %p113_p3 = scmp.ne.s32.totalorder %s731_s13, %s727_s12  ;;  %p114_p4 = scmp.eq.s32.totalorder %s555_s17, 1 }
   0x9   : > { %s804_s21 = scalar_select %p95_p1, %s735_s14, %s97_s19  }
   0xa   : > { %p806_p5 = por %p108_p2, %p107_p0  ;;  %p810_p6 = por %p114_p4, %p113_p3 }
   0xb   : > { %p556_p7 = scmp.ge.s32.totalorder %s739_s15, 1  ;;  %p121_p8 = scmp.lt.s32.totalorder %s739_s15, 3 }
   0xc   : > { %p600_p9 = scmp.eq.s32.totalorder %s789_s16, 0  ;;  %s132_s26 = sshll.u32 %s888_s2, 4  ;;  %s133_s26 = int_to_ptr.hbm [resolvable:$true] %s132_s26 }
   0xd   : > { %p122_p10 = pnand %p556_p7, %p121_p8  ;;  %s741_s27 = smov [#allocation2]  }
   0xe   : > { %s134_s28 = sshll.u32 %s741_s27, 4  ;;  %s742_s29 = smov 128   ;;  %s135_s28 = int_to_ptr.vmem [resolvable:$true] %s134_s28 }
   0xf   : > { %p592_p11 = pneg %p122_p10  ;;  %s743_s30 = smov 8  }
  0x10   : > { %168 = sbr.rel (%p122_p10) target bundleno = 317 (0x13d), region = 32 }
  0x11   : > { %p593_p12 = pnand %p600_p9, %p592_p11 }
  0x13   : > { %595 = dma.hbm_to_vmem [thread:$0]  (!%p593_p12), %s133_s26, 384, %s135_s28, [#allocation3], %s742_s29, %s742_s29, %s743_s30  }
  0x15   : > { %718 = dma.done.wait (%p600_p9), [#allocation3], 384  }
  0x16   : > { %720 = vsyncadd (%p600_p9), [#allocation3], 4294966912  ;;  %s562_s4 = sshll.u32 %s789_s16, 1  ;;  %v744_v0 = vmov 0   ;;  %vm237_vm0 = vcmask 1044480   ;;  %v228_v2 = vld [vmem:[#allocation2 + $0x8] sm:$0xff]  ;;  %v211_v22 = vlaneseq }
  0x17   : > { %642 = vset.pattern.permute.xlu0 %v744_v0  ;;  %p199_p13 = scmp.lt.s32.totalorder %s562_s4, 3  ;;  %v229_v3 = vld [vmem:[#allocation2 + $0x10] sm:$0x1f]  ;;  %v256_v4 = vand.u32 4294901760, %v228_v2  ;;  %v227_v16 = vld [vmem:[#allocation2] sm:$0xff]  ;;  %vm230_vm1 = vcmask 171008  }
  0x18   : > { %v239_v5 = vsel %vm237_vm0, %v229_v3, 0  ;;  %v258_v17 = vand.u32 4294901760, %v227_v16  ;;  %v212_v23 = vand.u32 127, %v211_v22  ;;  %v745_v25 = vmov 0.0   ;;  %s195_s17 = sand.u32 1, %s731_s13   ;;  %s579_s20 = sshll.u32 %s789_s16, 4 }
  0x19   : > { %s897_s4 = smov (!%p199_p13, %s562_s4), 3  ;;  %v254_v6 = vand.u32 4294901760, %v239_v5  ;;  %v297_v7 = vsub.f32 %v228_v2, %v256_v4  ;;  %s561_s19 = sshll.u32 %s195_s17, 4  ;;  %vm450_vm4 = vcmask 261120  }
  0x1a   : > { %s563_s5 = sshll.u32 %s897_s4, 3  ;;  %v303_v18 = vsub.f32 %v227_v16, %v258_v17  ;;  %s465_s26 = scalar_lea.hbm %s889_s3, %s579_s20 }
  0x1b   : > { %s202_s8 = scalar_lea.vmem %s886_s0, %s563_s5  ;;  %v291_v9 = vsub.f32 %v239_v5, %v254_v6  ;;  %v298_v10 = vand.u32 4294901760, %v297_v7  ;;  %580 = vmatpush.msra.mxu2 %v254_v6  ;;  %255 = vmatpush.msra.mxu0 %v254_v6  ;;  %s208_s11 = scalar_lea.vmem %s887_s1, %s563_s5 }
  0x1c   : > { %v214_v1 = vld [vmem:[%s202_s8 + $0x8] sm:$0xff]  ;;  %v213_v8 = vld [vmem:[%s202_s8] sm:$0xff]  ;;  %v304_v19 = vand.u32 4294901760, %v303_v18  ;;  %s197_s27 = scalar_lea.vmem [#allocation5], %s561_s19  ;;  %s468_s28 = sshll.u32 %s465_s26, 4  ;;  %s469_s28 = int_to_ptr.hbm [resolvable:$true] %s468_s28 }
  0x1d   : > { %219 = vperm.xlu0 %642, %v214_v1   ;;  %v292_v11 = vand.u32 4294901760, %v291_v9  ;;  %v299_v12 = vsub.f32 %v297_v7, %v298_v10  ;;  %581 = vmatpush.msra.mxu2 %v256_v4  ;;  %v444_v47 = vld [vmem:[%s208_s11] sm:$0xff]  ;;  %v445_v58 = vld [vmem:[%s208_s11 + $0x8] sm:$0xff]  ;;  %s466_s16 = sshll.u32 %s197_s27, 4  ;;  %s454_s29 = scalar_lea.sflag [#allocation4], %s195_s17  ;;  %s467_s16 = int_to_ptr.vmem [resolvable:$true] %s466_s16 }
  0x1e   : > { %257 = vmatpush.msra.mxu0 %v256_v4  ;;  %v305_v20 = vsub.f32 %v303_v18, %v304_v19  ;;  %v446_v51 = vmul.f32 5.656854, %v444_v47  ;;  %v447_v62 = vmul.f32 5.656854, %v445_v58  ;;  %s687_s30 = sshra.s32 %s469_s28, 4  ;;  %s693_s7 = scalar_lea.hbm %s889_s3, 32  ;;  %s688_s30 = int_to_ptr.hbm [resolvable:$true] %s687_s30 }
  0x1f   : > { %v293_v13 = vsub.f32 %v291_v9, %v292_v11  ;;  %v300_v15 = vand.u32 4294901760, %v299_v12  ;;  %582 = vmatpush.msra.mxu2 %v258_v17  ;;  %s689_s4 = scalar_lea.hbm %s688_s30, 16  ;;  %p694_p3 = scmp.lt.s32.totalorder %s688_s30, %s889_s3 }
  0x20   : > { %259 = vmatpush.msra.mxu0 %v258_v17  ;;  %v306_v21 = vand.u32 4294901760, %v305_v20  ;;  %p690_p0 = scmp.ne.s32.totalorder %s688_s30, %s689_s4  ;;  %p695_p4 = scmp.lt.s32.totalorder %s693_s7, %s689_s4 }
  0x21   : > { %v294_v14 = vand.u32 4294901760, %v293_v13  ;;  %332 = vmatpush.msrb.mxu2 %v291_v9 }
  0x22   : > { %398 = vmatpush.msrb.mxu0 %v292_v11  ;;  %p691_p1 = pnand %p690_p0, %p806_p5  ;;  %p696_p7 = por %p695_p4, %p694_p3 }
  0x23   : > { %583 = vmatpush.msra.mxu3 %v294_v14  ;;  %295 = vmatpush.msra.mxu1 %v294_v14 }
  0x24   : > { %335 = vmatpush.msrb.mxu2 %v297_v7  ;;  %402 = vmatpush.msrb.mxu0 %v298_v10  ;;  %p692_p2 = pneg %p691_p1 }
  0x25   : > { %216 = vperm.xlu0 %642, %v213_v8   ;;  %584 = vmatpush.msra.mxu3 %v300_v15 }
  0x26   : > { %301 = vmatpush.msra.mxu1 %v300_v15  ;;  %338 = vmatpush.msrb.mxu2 %v303_v18  ;;  %p697_p8 = pnand %p696_p7, %p692_p2 }
  0x27   : > { %406 = vmatpush.msrb.mxu0 %v304_v19  ;;  %585 = vmatpush.msra.mxu3 %v306_v21 }
  0x28   : > { %307 = vmatpush.msra.mxu1 %v306_v21 }
  0x29   : > { %364 = vmatpush.msrb.mxu3 %v254_v6 }
  0x2a   : > { %430 = vmatpush.msrb.mxu1 %v254_v6 }
  0x2b   : > { %366 = vmatpush.msrb.mxu3 %v256_v4 }
  0x2c   : > { %432 = vmatpush.msrb.mxu1 %v256_v4 }
  0x2d   : > { %368 = vmatpush.msrb.mxu3 %v258_v17 }
  0x2e   : > { %434 = vmatpush.msrb.mxu1 %v258_v17 }
  0x8f   : > { %v220_v24 = vpop.permute.xlu0 %219 }
  0x90   : > { %vm222_vm2 = vcmp.eq.s32.totalorder %v212_v23, %v220_v24 }
  0x91   : > { %v567_v26 = vsel %vm222_vm2, 1.0, %v745_v25 }
  0x92   : > { %v235_v27 = vsel %vm230_vm1, %v567_v26, 0  ;;  %569 = vmatmul.msk.f32.vlgmr.msra.gmra.mxu3 %vm230_vm1, %v567_v26 }
  0x93   : > { %v269_v28 = vsub.f32 %v235_v27, %v235_v27 }
  0x95   : > { %v270_v29 = vand.u32 4294901760, %v269_v28 }
  0x97   : > { %v217_v30 = vpop.permute.xlu0 %216  ;;  %v271_v31 = vsub.f32 %v269_v28, %v270_v29 }
  0x98   : > { %vm221_vm3 = vcmp.eq.s32.totalorder %v212_v23, %v217_v30 }
  0x99   : > { %v566_v32 = vsel %vm221_vm3, 1.0, %v745_v25  ;;  %v272_v33 = vand.u32 4294901760, %v271_v31 }
  0x9a   : > { %v232_v34 = vsel %vm230_vm1, %v566_v32, 0  ;;  %568 = vmatmul.msk.f32.vlgmr.msra.gmra.mxu1 %vm230_vm1, %v566_v32 }
  0x9b   : > { %v261_v35 = vsub.f32 %v232_v34, %v232_v34  ;;  %273 = vmatmul.f32.vlgmr.msra.gmra.mxu2 %v272_v33 }
  0x9d   : > { %v262_v36 = vand.u32 4294901760, %v261_v35 }
  0x9f   : > { %372 = vmatmul.f32.vlgmr.msrb.gmra.mxu3 %v262_v36  ;;  %v263_v37 = vsub.f32 %v261_v35, %v262_v36 }
  0xa1   : > { %v264_v38 = vand.u32 4294901760, %v263_v37 }
  0xa2   : > { %572 = vmatmul.msk.f32.vlgmr.msrb.gmra.mxu1 %vm230_vm1, %v566_v32 }
  0xa3   : > { %265 = vmatmul.f32.vlgmr.msra.gmra.mxu0 %v264_v38  ;;  %341 = vmatmul.f32.vlgmr.msrb.gmra.mxu2 %v261_v35 }
  0xa7   : > { %378 = vmatmul.f32.gmra.mxu3 %v270_v29 }
  0xaa   : > { %573 = vmatmul.msk.f32.gmra.mxu1 %vm230_vm1, %v567_v26 }
  0xab   : > { %346 = vmatmul.f32.gmra.mxu2 %v269_v28  ;;  %570 = vmatmul.msk.f32.vlgmr.msrb.gmra.mxu0 %vm230_vm1, %v566_v32 }
  0xb3   : > { %571 = vmatmul.msk.f32.gmra.mxu0 %vm230_vm1, %v567_v26 }
 0x115   : > { %v314_v39 = vpop.f32.mrf.mxu3 }
 0x117   : > { %v310_v41 = vpop.f32.mrf.mxu1 }
 0x11e   : > { %v274_v40 = vpop.f32.mrf.mxu2 }
 0x11f   : > { %v437_v50 = vpop.f32.mrf.mxu1  ;;  %v315_v53 = vadd.f32 %v314_v39, %v274_v40 }
 0x120   : > { %v266_v42 = vpop.f32.mrf.mxu0 }
 0x121   : > { %v311_v43 = vadd.f32 %v310_v41, %v266_v42 }
 0x122   : > { %v373_v44 = vpop.f32.mrf.mxu3 }
 0x126   : > { %v342_v45 = vpop.f32.mrf.mxu2 }
 0x127   : > { %v343_v46 = vadd.f32 %v342_v45, %v311_v43  ;;  %v441_v0 = vpop.f32.mrf.mxu1 }
 0x128   : > { %v409_v48 = vpop.f32.mrf.mxu0 }
 0x129   : > { %v374_v49 = vadd.f32 %v373_v44, %v343_v46 }
 0x12a   : > { %v379_v59 = vpop.f32.mrf.mxu3 }
 0x12b   : > { %v410_v52 = vadd.f32 %v409_v48, %v374_v49 }
 0x12d   : > { %v438_v54 = vadd.f32 %v437_v50, %v410_v52 }
 0x12e   : > { %v347_v55 = vpop.f32.mrf.mxu2 }
 0x12f   : > { %v448_v56 = vadd.f32 %v446_v51, %v438_v54  ;;  %v348_v57 = vadd.f32 %v347_v55, %v315_v53 }
 0x130   : > { %v413_v61 = vpop.f32.mrf.mxu0 }
 0x131   : > { %451 = vst.msk [vmem:[%s197_s27] sm:$0xff] %vm450_vm4, %v448_v56  ;;  %v380_v60 = vadd.f32 %v379_v59, %v348_v57 }
 0x133   : > { %v414_v63 = vadd.f32 %v413_v61, %v380_v60 }
 0x135   : > { %v442_v1 = vadd.f32 %v441_v0, %v414_v63 }
 0x137   : > { %v449_v2 = vadd.f32 %v447_v62, %v442_v1 }
 0x139   : > { %452 = vst.msk [vmem:[%s197_s27 + $0x8] sm:$0xff] %vm450_vm4, %v449_v2 }
 0x13a   : > { %700 = shalt.err (!%p697_p8)
}
 0x13b   : > { %s746_s10 = smov 128   ;;  %s747_s11 = smov 8  }
 0x13c   : > { %590 = dma.vmem_to_hbm [thread:$0]  (%p806_p5), %s467_s16, 256, %s469_s28, %s454_s29, %s746_s10, %s746_s10, %s747_s11  }
 0x13d PF: > { %p602_p9 = scmp.ge.s32.totalorder %s739_s15, 2  ;;  %s483_s17 = sand.u32 1, %s727_s12  }
 0x13e   : > { %s484_s19 = scalar_lea.sflag [#allocation4], %s483_s17 }
 0x13f   : > { %p597_p10 = pnand %p602_p9, %p810_p6 }
 0x141   : > { %p598_p11 = pneg %p597_p10 }
 0x143   : > { %722 = dma.done.wait (%p598_p11), %s484_s19, 256  }
 0x144   : > { %724 = vsyncadd (%p598_p11), %s484_s19, 4294967040  ;;  %p14_p12 = scmp.ge.s32.totalorder %s793_s18, 4   ;;  %s892_s12 = smov %s731_s13 }
 0x145   : > { %s893_s13 = smov %s735_s14  ;;  %s894_s14 = smov %s804_s21 }
 0x146   : > { %s895_s15 = smov %s793_s18  ;;  %16 = sbr.rel (!%p14_p12) target bundleno = 4 (0x4), region = 75 }
 0x14b   :  { %490 = vsyncpa [#allocation3], 1 }
 0x14c   :  { %492 = vsyncpa [#allocation3 + $0x1], 1 }
 0x14d   :  { %493 = vsyncpa [#allocation4], 1 }
 0x14e   :  { %495 = vsyncpa [#allocation4 + $0x1], 1 }

// kernel: tpu_custom_call.1
= control target key start
LH: loop header
LB: loop body
LE: loop exit
PB: predicated region body
PF: predicated region fallthrough
CT: control target
= control target key end

     0   :  { %8 = vsyncpa [#allocation3], 0  ;;  %s886_s0 = inlined_call_operand.vmem [shape: s32[32,1], index: 0, kind: input, shape index: {}]   ;;  %s887_s1 = inlined_call_operand.vmem [shape: f32[32,32], index: 1, kind: input, shape index: {}]   ;;  %s888_s2 = inlined_call_operand.hbm [shape: f32[21,32], index: 2, kind: input, shape index: {}]   ;;  %s889_s3 = inlined_call_operand.hbm [shape: f32[32,32], index: 3, kind: output, shape index: {}]  }
   0x1   :  { %9 = vsyncpa [#allocation4], 0 }
   0x2   :  { %11 = vsyncpa [#allocation4 + $0x1], 0  ;;  %s768_s12 = smov 0   ;;  %s770_s13 = smov 0  }
   0x3   :  { %s772_s14 = smov 0   ;;  %s774_s15 = smov 0  }
   0x4 LB: > { %s789_s16 = sadd.s32 4294967295, %s739_s15   ;;  %s555_s17 = sadd.s32 4294967294, %s739_s15   ;;  %s739_s15 = sphi %s774_s15, %s895_s15   ;;  %s735_s14 = sphi %s772_s14, %s894_s14   ;;  %s731_s13 = sphi %s770_s13, %s893_s13   ;;  %s727_s12 = sphi %s768_s12, %s892_s12  }
   0x5   : > { %s793_s18 = sadd.s32 1, %s739_s15   ;;  %s97_s19 = sadd.s32 1, %s735_s14 }
   0x6   : > { %s94_s20 = ssub.s32 %s739_s15, %s793_s18  ;;  %p107_p0 = scmp.ne.s32.totalorder %s735_s14, %s731_s13 }
   0x7   : > { %p95_p1 = scmp.eq.s32.totalorder %s94_s20, 0  ;;  %p108_p2 = scmp.eq.s32.totalorder %s789_s16, 1 }
   0x8   : > { %p113_p3 = scmp.ne.s32.totalorder %s731_s13, %s727_s12  ;;  %p114_p4 = scmp.eq.s32.totalorder %s555_s17, 1 }
   0x9   : > { %s804_s21 = scalar_select %p95_p1, %s735_s14, %s97_s19  }
   0xa   : > { %p806_p5 = por %p108_p2, %p107_p0  ;;  %p810_p6 = por %p114_p4, %p113_p3 }
   0xb   : > { %p556_p7 = scmp.ge.s32.totalorder %s739_s15, 1  ;;  %p121_p8 = scmp.lt.s32.totalorder %s739_s15, 3 }
   0xc   : > { %p600_p9 = scmp.eq.s32.totalorder %s789_s16, 0  ;;  %s132_s26 = sshll.u32 %s888_s2, 4  ;;  %s133_s26 = int_to_ptr.hbm [resolvable:$true] %s132_s26 }
   0xd   : > { %p122_p10 = pnand %p556_p7, %p121_p8  ;;  %s741_s27 = smov [#allocation2]  }
   0xe   : > { %s134_s28 = sshll.u32 %s741_s27, 4  ;;  %s742_s29 = smov 128   ;;  %s135_s28 = int_to_ptr.vmem [resolvable:$true] %s134_s28 }
   0xf   : > { %p592_p11 = pneg %p122_p10  ;;  %s743_s30 = smov 8  }
  0x10   : > { %168 = sbr.rel (%p122_p10) target bundleno = 317 (0x13d), region = 32 }
  0x11   : > { %p593_p12 = pnand %p600_p9, %p592_p11 }
  0x13   : > { %595 = dma.hbm_to_vmem [thread:$0]  (!%p593_p12), %s133_s26, 384, %s135_s28, [#allocation3], %s742_s29, %s742_s29, %s743_s30  }
  0x15   : > { %718 = dma.done.wait (%p600_p9), [#allocation3], 384  }
  0x16   : > { %720 = vsyncadd (%p600_p9), [#allocation3], 4294966912  ;;  %s562_s4 = sshll.u32 %s789_s16, 1  ;;  %v744_v0 = vmov 0   ;;  %vm237_vm0 = vcmask 1044480   ;;  %v228_v2 = vld [vmem:[#allocation2 + $0x8] sm:$0xff]  ;;  %v211_v22 = vlaneseq }
  0x17   : > { %642 = vset.pattern.permute.xlu0 %v744_v0  ;;  %p199_p13 = scmp.lt.s32.totalorder %s562_s4, 3  ;;  %v229_v3 = vld [vmem:[#allocation2 + $0x10] sm:$0x1f]  ;;  %v256_v4 = vand.u32 4294901760, %v228_v2  ;;  %v227_v16 = vld [vmem:[#allocation2] sm:$0xff]  ;;  %vm230_vm1 = vcmask 171008  }
  0x18   : > { %v239_v5 = vsel %vm237_vm0, %v229_v3, 0  ;;  %v258_v17 = vand.u32 4294901760, %v227_v16  ;;  %v212_v23 = vand.u32 127, %v211_v22  ;;  %v745_v25 = vmov 0.0   ;;  %s195_s17 = sand.u32 1, %s731_s13   ;;  %s579_s20 = sshll.u32 %s789_s16, 4 }
  0x19   : > { %s897_s4 = smov (!%p199_p13, %s562_s4), 3  ;;  %v254_v6 = vand.u32 4294901760, %v239_v5  ;;  %v297_v7 = vsub.f32 %v228_v2, %v256_v4  ;;  %s561_s19 = sshll.u32 %s195_s17, 4  ;;  %vm450_vm4 = vcmask 261120  }
  0x1a   : > { %s563_s5 = sshll.u32 %s897_s4, 3  ;;  %v303_v18 = vsub.f32 %v227_v16, %v258_v17  ;;  %s465_s26 = scalar_lea.hbm %s889_s3, %s579_s20 }
  0x1b   : > { %s202_s8 = scalar_lea.vmem %s886_s0, %s563_s5  ;;  %v291_v9 = vsub.f32 %v239_v5, %v254_v6  ;;  %v298_v10 = vand.u32 4294901760, %v297_v7  ;;  %580 = vmatpush.msra.mxu2 %v254_v6  ;;  %255 = vmatpush.msra.mxu0 %v254_v6  ;;  %s208_s11 = scalar_lea.vmem %s887_s1, %s563_s5 }
  0x1c   : > { %v214_v1 = vld [vmem:[%s202_s8 + $0x8] sm:$0xff]  ;;  %v213_v8 = vld [vmem:[%s202_s8] sm:$0xff]  ;;  %v304_v19 = vand.u32 4294901760, %v303_v18  ;;  %s197_s27 = scalar_lea.vmem [#allocation5], %s561_s19  ;;  %s468_s28 = sshll.u32 %s465_s26, 4  ;;  %s469_s28 = int_to_ptr.hbm [resolvable:$true] %s468_s28 }
  0x1d   : > { %219 = vperm.xlu0 %642, %v214_v1   ;;  %v292_v11 = vand.u32 4294901760, %v291_v9  ;;  %v299_v12 = vsub.f32 %v297_v7, %v298_v10  ;;  %581 = vmatpush.msra.mxu2 %v256_v4  ;;  %v444_v47 = vld [vmem:[%s208_s11] sm:$0xff]  ;;  %v445_v58 = vld [vmem:[%s208_s11 + $0x8] sm:$0xff]  ;;  %s466_s16 = sshll.u32 %s197_s27, 4  ;;  %s454_s29 = scalar_lea.sflag [#allocation4], %s195_s17  ;;  %s467_s16 = int_to_ptr.vmem [resolvable:$true] %s466_s16 }
  0x1e   : > { %257 = vmatpush.msra.mxu0 %v256_v4  ;;  %v305_v20 = vsub.f32 %v303_v18, %v304_v19  ;;  %v446_v51 = vmul.f32 5.656854, %v444_v47  ;;  %v447_v62 = vmul.f32 5.656854, %v445_v58  ;;  %s687_s30 = sshra.s32 %s469_s28, 4  ;;  %s693_s7 = scalar_lea.hbm %s889_s3, 32  ;;  %s688_s30 = int_to_ptr.hbm [resolvable:$true] %s687_s30 }
  0x1f   : > { %v293_v13 = vsub.f32 %v291_v9, %v292_v11  ;;  %v300_v15 = vand.u32 4294901760, %v299_v12  ;;  %582 = vmatpush.msra.mxu2 %v258_v17  ;;  %s689_s4 = scalar_lea.hbm %s688_s30, 16  ;;  %p694_p3 = scmp.lt.s32.totalorder %s688_s30, %s889_s3 }
  0x20   : > { %259 = vmatpush.msra.mxu0 %v258_v17  ;;  %v306_v21 = vand.u32 4294901760, %v305_v20  ;;  %p690_p0 = scmp.ne.s32.totalorder %s688_s30, %s689_s4  ;;  %p695_p4 = scmp.lt.s32.totalorder %s693_s7, %s689_s4 }
  0x21   : > { %v294_v14 = vand.u32 4294901760, %v293_v13  ;;  %332 = vmatpush.msrb.mxu2 %v291_v9 }
  0x22   : > { %398 = vmatpush.msrb.mxu0 %v292_v11  ;;  %p691_p1 = pnand %p690_p0, %p806_p5  ;;  %p696_p7 = por %p695_p4, %p694_p3 }
  0x23   : > { %583 = vmatpush.msra.mxu3 %v294_v14  ;;  %295 = vmatpush.msra.mxu1 %v294_v14 }
  0x24   : > { %335 = vmatpush.msrb.mxu2 %v297_v7  ;;  %402 = vmatpush.msrb.mxu0 %v298_v10  ;;  %p692_p2 = pneg %p691_p1 }
  0x25   : > { %216 = vperm.xlu0 %642, %v213_v8   ;;  %584 = vmatpush.msra.mxu3 %v300_v15 }
  0x26   : > { %301 = vmatpush.msra.mxu1 %v300_v15  ;;  %338 = vmatpush.msrb.mxu2 %v303_v18  ;;  %p697_p8 = pnand %p696_p7, %p692_p2 }
  0x27   : > { %406 = vmatpush.msrb.mxu0 %v304_v19  ;;  %585 = vmatpush.msra.mxu3 %v306_v21 }
  0x28   : > { %307 = vmatpush.msra.mxu1 %v306_v21 }
  0x29   : > { %364 = vmatpush.msrb.mxu3 %v254_v6 }
  0x2a   : > { %430 = vmatpush.msrb.mxu1 %v254_v6 }
  0x2b   : > { %366 = vmatpush.msrb.mxu3 %v256_v4 }
  0x2c   : > { %432 = vmatpush.msrb.mxu1 %v256_v4 }
  0x2d   : > { %368 = vmatpush.msrb.mxu3 %v258_v17 }
  0x2e   : > { %434 = vmatpush.msrb.mxu1 %v258_v17 }
  0x8f   : > { %v220_v24 = vpop.permute.xlu0 %219 }
  0x90   : > { %vm222_vm2 = vcmp.eq.s32.totalorder %v212_v23, %v220_v24 }
  0x91   : > { %v567_v26 = vsel %vm222_vm2, 1.0, %v745_v25 }
  0x92   : > { %v235_v27 = vsel %vm230_vm1, %v567_v26, 0  ;;  %569 = vmatmul.msk.f32.vlgmr.msra.gmra.mxu3 %vm230_vm1, %v567_v26 }
  0x93   : > { %v269_v28 = vsub.f32 %v235_v27, %v235_v27 }
  0x95   : > { %v270_v29 = vand.u32 4294901760, %v269_v28 }
  0x97   : > { %v217_v30 = vpop.permute.xlu0 %216  ;;  %v271_v31 = vsub.f32 %v269_v28, %v270_v29 }
  0x98   : > { %vm221_vm3 = vcmp.eq.s32.totalorder %v212_v23, %v217_v30 }
  0x99   : > { %v566_v32 = vsel %vm221_vm3, 1.0, %v745_v25  ;;  %v272_v33 = vand.u32 4294901760, %v271_v31 }
  0x9a   : > { %v232_v34 = vsel %vm230_vm1, %v566_v32, 0  ;;  %568 = vmatmul.msk.f32.vlgmr.msra.gmra.mxu1 %vm230_vm1, %v566_v32 }
  0x9b   : > { %v261_v35 = vsub.f32 %v232_v34, %v232_v34  ;;  %273 = vmatmul.f32.vlgmr.msra.gmra.mxu2 %v272_v33 }
  0x9d   : > { %v262_v36 = vand.u32 4294901760, %v261_v35 }
  0x9f   : > { %372 = vmatmul.f32.vlgmr.msrb.gmra.mxu3 %v262_v36  ;;  %v263_v37 = vsub.f32 %v261_v35, %v262_v36 }
  0xa1   : > { %v264_v38 = vand.u32 4294901760, %v263_v37 }
  0xa2   : > { %572 = vmatmul.msk.f32.vlgmr.msrb.gmra.mxu1 %vm230_vm1, %v566_v32 }
  0xa3   : > { %265 = vmatmul.f32.vlgmr.msra.gmra.mxu0 %v264_v38  ;;  %341 = vmatmul.f32.vlgmr.msrb.gmra.mxu2 %v261_v35 }
  0xa7   : > { %378 = vmatmul.f32.gmra.mxu3 %v270_v29 }
  0xaa   : > { %573 = vmatmul.msk.f32.gmra.mxu1 %vm230_vm1, %v567_v26 }
  0xab   : > { %346 = vmatmul.f32.gmra.mxu2 %v269_v28  ;;  %570 = vmatmul.msk.f32.vlgmr.msrb.gmra.mxu0 %vm230_vm1, %v566_v32 }
  0xb3   : > { %571 = vmatmul.msk.f32.gmra.mxu0 %vm230_vm1, %v567_v26 }
 0x115   : > { %v314_v39 = vpop.f32.mrf.mxu3 }
 0x117   : > { %v310_v41 = vpop.f32.mrf.mxu1 }
 0x11e   : > { %v274_v40 = vpop.f32.mrf.mxu2 }
 0x11f   : > { %v437_v50 = vpop.f32.mrf.mxu1  ;;  %v315_v53 = vadd.f32 %v314_v39, %v274_v40 }
 0x120   : > { %v266_v42 = vpop.f32.mrf.mxu0 }
 0x121   : > { %v311_v43 = vadd.f32 %v310_v41, %v266_v42 }
 0x122   : > { %v373_v44 = vpop.f32.mrf.mxu3 }
 0x126   : > { %v342_v45 = vpop.f32.mrf.mxu2 }
 0x127   : > { %v343_v46 = vadd.f32 %v342_v45, %v311_v43  ;;  %v441_v0 = vpop.f32.mrf.mxu1 }
 0x128   : > { %v409_v48 = vpop.f32.mrf.mxu0 }
 0x129   : > { %v374_v49 = vadd.f32 %v373_v44, %v343_v46 }
 0x12a   : > { %v379_v59 = vpop.f32.mrf.mxu3 }
 0x12b   : > { %v410_v52 = vadd.f32 %v409_v48, %v374_v49 }
 0x12d   : > { %v438_v54 = vadd.f32 %v437_v50, %v410_v52 }
 0x12e   : > { %v347_v55 = vpop.f32.mrf.mxu2 }
 0x12f   : > { %v448_v56 = vadd.f32 %v446_v51, %v438_v54  ;;  %v348_v57 = vadd.f32 %v347_v55, %v315_v53 }
 0x130   : > { %v413_v61 = vpop.f32.mrf.mxu0 }
 0x131   : > { %451 = vst.msk [vmem:[%s197_s27] sm:$0xff] %vm450_vm4, %v448_v56  ;;  %v380_v60 = vadd.f32 %v379_v59, %v348_v57 }
 0x133   : > { %v414_v63 = vadd.f32 %v413_v61, %v380_v60 }
 0x135   : > { %v442_v1 = vadd.f32 %v441_v0, %v414_v63 }
 0x137   : > { %v449_v2 = vadd.f32 %v447_v62, %v442_v1 }
 0x139   : > { %452 = vst.msk [vmem:[%s197_s27 + $0x8] sm:$0xff] %vm450_vm4, %v449_v2 }
 0x13a   : > { %700 = shalt.err (!%p697_p8)
}
 0x13b   : > { %s746_s10 = smov 128   ;;  %s747_s11 = smov 8  }
 0x13c   : > { %590 = dma.vmem_to_hbm [thread:$0]  (%p806_p5), %s467_s16, 256, %s469_s28, %s454_s29, %s746_s10, %s746_s10, %s747_s11  }
 0x13d PF: > { %p602_p9 = scmp.ge.s32.totalorder %s739_s15, 2  ;;  %s483_s17 = sand.u32 1, %s727_s12  }
 0x13e   : > { %s484_s19 = scalar_lea.sflag [#allocation4], %s483_s17 }
 0x13f   : > { %p597_p10 = pnand %p602_p9, %p810_p6 }
 0x141   : > { %p598_p11 = pneg %p597_p10 }
 0x143   : > { %722 = dma.done.wait (%p598_p11), %s484_s19, 256  }
 0x144   : > { %724 = vsyncadd (%p598_p11), %s484_s19, 4294967040  ;;  %p14_p12 = scmp.ge.s32.totalorder %s793_s18, 4   ;;  %s892_s12 = smov %s731_s13 }
 0x145   : > { %s893_s13 = smov %s735_s14  ;;  %s894_s14 = smov %s804_s21 }
 0x146   : > { %s895_s15 = smov %s793_s18  ;;  %16 = sbr.rel (!%p14_p12) target bundleno = 4 (0x4), region = 75 }
 0x14b   :  { %490 = vsyncpa [#allocation3], 1 }
 0x14c   :  { %492 = vsyncpa [#allocation3 + $0x1], 1 }
 0x14d   :  { %493 = vsyncpa [#allocation4], 1 }
 0x14e   :  { %495 = vsyncpa [#allocation4 + $0x1], 1 }

</bundles_post_ra>
